<compile_context>
chip_gen: v6e
topology: v6e:2x2x1
jax: 0.10.0
libtpu: 0.0.40
codegen_flags: <defaults>
</compile_context>

<pallas_src>
import functools
from typing import NamedTuple, Optional

import jax
import jax.numpy as jnp
from jax.experimental import pallas as pl
from jax.experimental.pallas import tpu as pltpu


# ----------------------------- tiling helpers -----------------------------

def _round_up(x, m):
    return ((x + m - 1) // m) * m


def _vmem_budget_bytes():
    """Usable scoped-VMEM budget with headroom, per TPU generation."""
    cap = None
    try:
        info = pltpu.get_tpu_info()
        cap = getattr(info, "vmem_capacity_bytes", None)
    except Exception:
        cap = None
    if not cap:
        cap = 64 * 1024 * 1024  # conservative default (v7x per-TensorCore VMEM)
    # ~78% of physical: ~100 MiB on v5e/v6e (128 MiB), ~50 MiB on v7x (64 MiB).
    return int(cap * 0.78)


def _working_set_bytes(tm, tf, H, act_bytes):
    """Estimated VMEM working set: double-buffered tiles + f32 accumulator."""
    dbl = 2  # BlockSpec double buffering
    x_t = tm * H * act_bytes * dbl
    w1_t = H * (2 * tf) * act_bytes * dbl      # merged [gate|up] block
    w2_t = tf * H * act_bytes * dbl
    out_t = tm * H * act_bytes * dbl
    acc = tm * H * 4                           # f32 scratch accumulator
    bias = (2 * tf + H) * act_bytes * dbl
    return x_t + w1_t + w2_t + out_t + acc + bias


def _choose_tf(F, H, act_bytes, budget):
    """Largest ffn tile (>=256 preferred for the 256-wide MXU on v6e/v7x)
    whose padding overhead and VMEM working set are acceptable."""
    F128 = _round_up(F, 128)
    cands = [F128] if F128 <= 512 else [512, 256, 128]
    for tf in cands:
        extra_pad = _round_up(F, tf) - F128    # padding beyond the unavoidable 128-align
        if extra_pad > 0.07 * F:
            continue
        if _working_set_bytes(128, tf, H, act_bytes) <= budget:
            return tf
    return cands[-1]


def _choose_tm(T, tf, H, act_bytes, budget):
    T8 = _round_up(T, 8)
    for tm in (1024, 512, 256, 128, 64, 32, 16, 8):
        tm_eff = min(tm, T8)
        if _working_set_bytes(tm_eff, tf, H, act_bytes) <= budget:
            return tm_eff
    return 8


# ----------------------------- weight preparation -----------------------------

class MLPMeta(NamedTuple):
    tf: int
    F: int
    F_pad: int
    H: int


def prepare_glm_mlp_params(w_h_to_4h, w_4h_to_h, b_h_to_4h=None, b_4h_to_h=None):
    """Pad + permute weights ONCE (at load time).

    w_h_to_4h : (H, 2F) merged [gate | up], stored (in, out)
    w_4h_to_h : (F, H)  stored (in, out)
    Returns (w1p, w2p, b1p, b2p, meta) where w1p is interleaved so each ffn
    block f holds [gate_block_f | up_block_f] adjacently -> one DMA stream,
    one MXU call per step.
    """
    H, F2 = w_h_to_4h.shape
    F = F2 // 2
    assert w_4h_to_h.shape == (F, H)

    act_bytes = jnp.dtype(w_h_to_4h.dtype).itemsize
    budget = _vmem_budget_bytes()
    tf = _choose_tf(F, H, act_bytes, budget)
    F_pad = _round_up(F, tf)
    nf = F_pad // tf

    gate = w_h_to_4h[:, :F]
    up = w_h_to_4h[:, F:]
    if F_pad != F:
        pad = ((0, 0), (0, F_pad - F))
        gate = jnp.pad(gate, pad)              # zero columns -> act == 0 -> no contribution
        up = jnp.pad(up, pad)
        w2p = jnp.pad(w_4h_to_h, ((0, F_pad - F), (0, 0)))
    else:
        w2p = w_4h_to_h
    w1p = jnp.concatenate(
        [gate.reshape(H, nf, 1, tf), up.reshape(H, nf, 1, tf)], axis=2
    ).reshape(H, 2 * F_pad)

    b1p = b2p = None
    if b_h_to_4h is not None:
        assert b_4h_to_h is not None
        bg, bu = b_h_to_4h[:F], b_h_to_4h[F:]
        if F_pad != F:
            bg = jnp.pad(bg, (0, F_pad - F))
            bu = jnp.pad(bu, (0, F_pad - F))
        b1p = jnp.concatenate(
            [bg.reshape(nf, 1, tf), bu.reshape(nf, 1, tf)], axis=1
        ).reshape(1, 2 * F_pad)
        b2p = b_4h_to_h.reshape(1, H)

    return w1p, w2p, b1p, b2p, MLPMeta(tf=tf, F=F, F_pad=F_pad, H=H)


# ----------------------------- fused MLP kernel -----------------------------

def _mlp_body(x_ref, w1_ref, w2_ref, b1_ref, b2_ref, o_ref, acc_ref, *, tf):
    x = x_ref[...]
    # First projection: one MXU call on the merged [gate|up] block (tm, 2*tf).
    h = jnp.dot(x, w1_ref[...], preferred_element_type=jnp.float32)
    if b1_ref is not None:
        h = h + b1_ref[...].astype(jnp.float32)
    gate = h[:, :tf]                            # lane slicing (tf multiple of 128)
    up = h[:, tf:]
    # SiluAndMul epilogue (sigmoid -> EUP slot, hidden under the MXU).
    act = (gate * jax.nn.sigmoid(gate) * up).astype(w2_ref.dtype)
    part = jnp.dot(act, w2_ref[...], preferred_element_type=jnp.float32)   # (tm, H)

    if acc_ref is None:
        # nf == 1: no reduction -> skip the scratch + extra RMW pass entirely.
        if b2_ref is not None:
            part = part + b2_ref[...].astype(jnp.float32)
        o_ref[...] = part.astype(o_ref.dtype)
        return

    f = pl.program_id(1)

    @pl.when(f == 0)
    def _():
        acc_ref[...] = part

    @pl.when(f != 0)
    def _():
        acc_ref[...] += part

    @pl.when(f == pl.num_programs(1) - 1)
    def _():
        out = acc_ref[...]
        if b2_ref is not None:
            out = out + b2_ref[...].astype(jnp.float32)
        o_ref[...] = out.astype(o_ref.dtype)


def _make_kernel(tf, add_bias, single_step):
    if add_bias and single_step:
        def k(x, w1, b1, w2, b2, o):
            _mlp_body(x, w1, w2, b1, b2, o, None, tf=tf)
    elif add_bias:
        def k(x, w1, b1, w2, b2, o, acc):
            _mlp_body(x, w1, w2, b1, b2, o, acc, tf=tf)
    elif single_step:
        def k(x, w1, w2, o):
            _mlp_body(x, w1, w2, None, None, o, None, tf=tf)
    else:
        def k(x, w1, w2, o, acc):
            _mlp_body(x, w1, w2, None, None, o, acc, tf=tf)
    return k


# ----------------------------- wrapper -----------------------------

def glm_mlp(hidden_states, w1p, w2p, b1p=None, b2p=None, *, meta: MLPMeta):
    """Fused GLMMLP forward.  hidden_states: (T, H)."""
    T, H = hidden_states.shape
    assert H == meta.H
    tf, F_pad = meta.tf, meta.F_pad
    nf = F_pad // tf
    add_bias = b1p is not None
    single_step = nf == 1

    act_bytes = jnp.dtype(hidden_states.dtype).itemsize
    budget = _vmem_budget_bytes()
    tm = _choose_tm(T, tf, H, act_bytes, budget)
    T_pad = _round_up(T, tm)
    x = hidden_states
    if T_pad != T:
        x = jnp.pad(x, ((0, T_pad - T), (0, 0)))
    nm = T_pad // tm
    grid = (nm, nf)

    x_spec = pl.BlockSpec((tm, H), lambda m, f: (m, 0))
    w1_spec = pl.BlockSpec((H, 2 * tf), lambda m, f: (0, f))
    w2_spec = pl.BlockSpec((tf, H), lambda m, f: (f, 0))
    out_spec = pl.BlockSpec((tm, H), lambda m, f: (m, 0))

    in_specs = [x_spec, w1_spec]
    args = [x, w1p]
    if add_bias:
        in_specs.append(pl.BlockSpec((1, 2 * tf), lambda m, f: (0, f)))
        args.append(b1p)
    in_specs.append(w2_spec)
    args.append(w2p)
    if add_bias:
        in_specs.append(pl.BlockSpec((1, H), lambda m, f: (0, 0)))
        args.append(b2p)

    scratch = () if single_step else (pltpu.VMEM((tm, H), jnp.float32),)

    flops = 2 * T_pad * H * (2 * F_pad) + 2 * T_pad * F_pad * H
    bytes_accessed = (
        2 * T_pad * H * act_bytes                              # x in + out
        + nm * (2 * H * F_pad + F_pad * H) * act_bytes         # weights, re-streamed per token tile
        + (2 * F_pad + H) * act_bytes * (1 if add_bias else 0)
    )
    cost = pl.CostEstimate(flops=flops, transcendentals=T_pad * F_pad,
                           bytes_accessed=bytes_accessed)

    out = pl.pallas_call(
        _make_kernel(tf, add_bias, single_step),
        out_shape=jax.ShapeDtypeStruct((T_pad, H), hidden_states.dtype),
        grid=grid,
        in_specs=in_specs,
        out_specs=out_spec,
        scratch_shapes=scratch,
        compiler_params=pltpu.CompilerParams(
            dimension_semantics=("parallel", "arbitrary"),
            vmem_limit_bytes=budget,
        ),
        cost_estimate=cost,
    )(*args)
    return out[:T] if T_pad != T else out


# ----------------------------- reference (pure JAX) -----------------------------

def glm_mlp_ref(x, w1, w2, b1=None, b2=None):
    xf = x.astype(jnp.float32)
    h = xf @ w1.astype(jnp.float32)
    if b1 is not None:
        h = h + b1.astype(jnp.float32)
    F = w2.shape[0]
    gate, up = h[:, :F], h[:, F:]
    act = (gate * jax.nn.sigmoid(gate) * up).astype(w2.dtype).astype(jnp.float32)
    out = act @ w2.astype(jnp.float32)
    if b2 is not None:
        out = out + b2.astype(jnp.float32)
    return out.astype(x.dtype)


# ----------------------------- main -----------------------------

if __name__ == "__main__":
    key = jax.random.PRNGKey(0)
    k_x1, k_w1, k_w2, k_x2, k_w3, k_w4, k_b1, k_b2 = jax.random.split(key, 8)
    dtype = jnp.bfloat16

    # --- case 1: add_bias_linear = False (ChatGLM default), nf > 1 path ---
    T, H, F = 16, 128, 1024
    x = jax.random.normal(k_x1, (T, H), jnp.float32).astype(dtype)
    w1 = (jax.random.normal(k_w1, (H, 2 * F), jnp.float32)
          / jnp.sqrt(jnp.float32(H))).astype(dtype)           # dense_h_to_4h (merged gate|up)
    w2 = (jax.random.normal(k_w2, (F, H), jnp.float32)
          / jnp.sqrt(jnp.float32(F))).astype(dtype)           # dense_4h_to_h

    w1p, w2p, b1p, b2p, meta = prepare_glm_mlp_params(w1, w2)
    run = jax.jit(functools.partial(glm_mlp, meta=meta))
    out = jax.block_until_ready(run(x, w1p, w2p))
    ref = glm_mlp_ref(x, w1, w2)
    assert out.shape == (T, H)
    assert jnp.all(jnp.isfinite(out.astype(jnp.float32)))
    assert jnp.allclose(out.astype(jnp.float32), ref.astype(jnp.float32),
                        atol=3e-2, rtol=5e-2)

    # --- case 2: add_bias_linear = True, non-128-aligned F and non-8-aligned T
    #             (exercises ffn padding, token padding, and the nf==1 path) ---
    T2, H2, F2 = 12, 128, 320
    x2 = jax.random.normal(k_x2, (T2, H2), jnp.float32).astype(dtype)
    w1b = (jax.random.normal(k_w3, (H2, 2 * F2), jnp.float32)
           / jnp.sqrt(jnp.float32(H2))).astype(dtype)
    w2b = (jax.random.normal(k_w4, (F2, H2), jnp.float32)
           / jnp.sqrt(jnp.float32(F2))).astype(dtype)
    b1 = (0.1 * jax.random.normal(k_b1, (2 * F2,), jnp.float32)).astype(dtype)
    b2 = (0.1 * jax.random.normal(k_b2, (H2,), jnp.float32)).astype(dtype)

    w1p2, w2p2, b1p2, b2p2, meta2 = prepare_glm_mlp_params(w1b, w2b, b1, b2)
    run2 = jax.jit(functools.partial(glm_mlp, meta=meta2))
    out2 = jax.block_until_ready(run2(x2, w1p2, w2p2, b1p2, b2p2))
    ref2 = glm_mlp_ref(x2, w1b, w2b, b1, b2)
    assert out2.shape == (T2, H2)
    assert jnp.all(jnp.isfinite(out2.astype(jnp.float32)))
    assert jnp.allclose(out2.astype(jnp.float32), ref2.astype(jnp.float32),
                        atol=3e-2, rtol=5e-2)

    print("KERNEL_OK")
</pallas_src>

<mosaic_0001>
module attributes {stable_mosaic.version = 11 : i64} {
  func.func @k(%arg0: i32, %arg1: i32, %arg2: memref<16x128xbf16, #tpu.memory_space<vmem>>, %arg3: memref<128x1024xbf16, #tpu.memory_space<vmem>>, %arg4: memref<512x128xbf16, #tpu.memory_space<vmem>>, %arg5: memref<16x128xbf16, #tpu.memory_space<vmem>>, %arg6: memref<16x128xf32, #tpu.memory_space<vmem>>) attributes {dimension_semantics = [#tpu.dimension_semantics<parallel>, #tpu.dimension_semantics<arbitrary>], iteration_bounds = array<i64: 1, 2>, scalar_prefetch = 0 : i64, scratch_operands = 1 : i64, tpu.core_type = #tpu.core_type<tc>, window_params = [{transform_indices = @transform_0, window_bounds = array<i64: 16, 128>}, {transform_indices = @transform_1, window_bounds = array<i64: 128, 1024>}, {transform_indices = @transform_2, window_bounds = array<i64: 512, 128>}, {transform_indices = @transform_3, window_bounds = array<i64: 16, 128>}]} {
    %c0 = arith.constant 0 : index
    %c0_0 = arith.constant 0 : index
    %0 = vector.load %arg2[%c0, %c0_0] : memref<16x128xbf16, #tpu.memory_space<vmem>>, vector<16x128xbf16>
    %c0_1 = arith.constant 0 : index
    %c0_2 = arith.constant 0 : index
    %1 = vector.load %arg3[%c0_1, %c0_2] : memref<128x1024xbf16, #tpu.memory_space<vmem>>, vector<128x1024xbf16>
    %cst = arith.constant dense<0.000000e+00> : vector<16x1024xf32>
    %2 = tpu.matmul %0, %1, %cst {dimension_numbers = #tpu.dot_dimension_numbers<[1], [0], [0], [1], [0, 0, 1, 1], [], []>} : vector<16x128xbf16>, vector<128x1024xbf16>, vector<16x1024xf32> -> vector<16x1024xf32>
    %3 = vector.extract_strided_slice %2 {offsets = [0, 0], sizes = [16, 512], strides = [1, 1]} : vector<16x1024xf32> to vector<16x512xf32>
    %4 = vector.extract_strided_slice %2 {offsets = [0, 512], sizes = [16, 512], strides = [1, 1]} : vector<16x1024xf32> to vector<16x512xf32>
    %5 = arith.negf %3 : vector<16x512xf32>
    %6 = math.exp %5 : vector<16x512xf32>
    %cst_3 = arith.constant 1.000000e+00 : f32
    %7 = vector.broadcast %cst_3 : f32 to vector<16x512xf32>
    %8 = arith.addf %7, %6 : vector<16x512xf32>
    %9 = arith.divf %7, %8 : vector<16x512xf32>
    %10 = arith.mulf %3, %9 : vector<16x512xf32>
    %11 = arith.mulf %10, %4 : vector<16x512xf32>
    %12 = arith.truncf %11 : vector<16x512xf32> to vector<16x512xbf16>
    %c0_4 = arith.constant 0 : index
    %c0_5 = arith.constant 0 : index
    %13 = vector.load %arg4[%c0_4, %c0_5] : memref<512x128xbf16, #tpu.memory_space<vmem>>, vector<512x128xbf16>
    %cst_6 = arith.constant dense<0.000000e+00> : vector<16x128xf32>
    %14 = tpu.matmul %12, %13, %cst_6 {dimension_numbers = #tpu.dot_dimension_numbers<[1], [0], [0], [1], [0, 0, 1, 1], [], []>} : vector<16x512xbf16>, vector<512x128xbf16>, vector<16x128xf32> -> vector<16x128xf32>
    %c0_i32 = arith.constant 0 : i32
    %15 = arith.cmpi eq, %arg1, %c0_i32 : i32
    %16 = arith.extui %15 : i1 to i32
    %c0_i32_7 = arith.constant 0 : i32
    %17 = arith.cmpi ne, %16, %c0_i32_7 : i32
    scf.if %17 {
      %c0_11 = arith.constant 0 : index
      %c0_12 = arith.constant 0 : index
      %24 = vector.load %arg6[%c0_11, %c0_12] : memref<16x128xf32, #tpu.memory_space<vmem>>, vector<16x128xf32>
      tpu.vector_store %arg6[%c0_11, %c0_12], %14 {strides = array<i32>} : memref<16x128xf32, #tpu.memory_space<vmem>>, vector<16x128xf32>,
    } else {
    }
    %c0_i32_8 = arith.constant 0 : i32
    %18 = arith.cmpi ne, %arg1, %c0_i32_8 : i32
    %19 = arith.extui %18 : i1 to i32
    %c0_i32_9 = arith.constant 0 : i32
    %20 = arith.cmpi ne, %19, %c0_i32_9 : i32
    scf.if %20 {
      %c0_11 = arith.constant 0 : index
      %c0_12 = arith.constant 0 : index
      %24 = vector.load %arg6[%c0_11, %c0_12] : memref<16x128xf32, #tpu.memory_space<vmem>>, vector<16x128xf32>
      %25 = arith.addf %24, %14 : vector<16x128xf32>
      %c0_13 = arith.constant 0 : index
      %c0_14 = arith.constant 0 : index
      %26 = vector.load %arg6[%c0_13, %c0_14] : memref<16x128xf32, #tpu.memory_space<vmem>>, vector<16x128xf32>
      tpu.vector_store %arg6[%c0_13, %c0_14], %25 {strides = array<i32>} : memref<16x128xf32, #tpu.memory_space<vmem>>, vector<16x128xf32>,
    } else {
    }
    %c1_i32 = arith.constant 1 : i32
    %21 = arith.cmpi eq, %arg1, %c1_i32 : i32
    %22 = arith.extui %21 : i1 to i32
    %c0_i32_10 = arith.constant 0 : i32
    %23 = arith.cmpi ne, %22, %c0_i32_10 : i32
    scf.if %23 {
      %c0_11 = arith.constant 0 : index
      %c0_12 = arith.constant 0 : index
      %24 = vector.load %arg6[%c0_11, %c0_12] : memref<16x128xf32, #tpu.memory_space<vmem>>, vector<16x128xf32>
      %25 = arith.truncf %24 : vector<16x128xf32> to vector<16x128xbf16>
      %c0_13 = arith.constant 0 : index
      %c0_14 = arith.constant 0 : index
      %26 = vector.load %arg5[%c0_13, %c0_14] : memref<16x128xbf16, #tpu.memory_space<vmem>>, vector<16x128xbf16>
      tpu.vector_store %arg5[%c0_13, %c0_14], %25 {strides = array<i32>} : memref<16x128xbf16, #tpu.memory_space<vmem>>, vector<16x128xbf16>,
    } else {
    }
    return
  }
  func.func @transform_0(%arg0: i32, %arg1: i32) -> (i32, i32) {
    %c0_i32 = arith.constant 0 : i32
    %c0_i32_0 = arith.constant 0 : i32
    return %arg0, %c0_i32 : i32, i32
  }
  func.func @transform_1(%arg0: i32, %arg1: i32) -> (i32, i32) {
    %c0_i32 = arith.constant 0 : i32
    %c0_i32_0 = arith.constant 0 : i32
    return %c0_i32, %arg1 : i32, i32
  }
  func.func @transform_2(%arg0: i32, %arg1: i32) -> (i32, i32) {
    %c0_i32 = arith.constant 0 : i32
    %c0_i32_0 = arith.constant 0 : i32
    return %arg1, %c0_i32 : i32, i32
  }
  func.func @transform_3(%arg0: i32, %arg1: i32) -> (i32, i32) {
    %c0_i32 = arith.constant 0 : i32
    %c0_i32_0 = arith.constant 0 : i32
    return %arg0, %c0_i32 : i32, i32
  }
}

</mosaic_0001>

<bundles_post_ra>
// kernel: glm_mlp.1
= control target key start
LH: loop header
LB: loop body
LE: loop exit
PB: predicated region body
PF: predicated region fallthrough
CT: control target
= control target key end

     0   :  { %8 = vsyncpa [#allocation4], 0  ;;  %s2184_s0 = inlined_call_operand.hbm [shape: bf16[16,128], index: 0, kind: input, shape index: {}]   ;;  %s2185_s1 = inlined_call_operand.hbm [shape: bf16[128,2048], index: 1, kind: input, shape index: {}]   ;;  %s2186_s2 = inlined_call_operand.hbm [shape: bf16[1024,128], index: 2, kind: input, shape index: {}]   ;;  %s2187_s3 = inlined_call_operand.hbm [shape: bf16[16,128], index: 3, kind: output, shape index: {}]  }
   0x1   :  { %9 = vsyncpa [#allocation7], 0 }
   0x2   :  { %11 = vsyncpa [#allocation7 + $0x1], 0 }
   0x3   :  { %12 = vsyncpa [#allocation5], 0  ;;  %s1898_s12 = smov 0   ;;  %s1900_s13 = smov 0  }
   0x4   :  { %s1902_s14 = smov 0   ;;  %s1904_s15 = smov 0  }
   0x5   :  { %s1906_s16 = smov 0   ;;  %s1908_s17 = smov 0  }
   0x6 LB: > { %s27_s18 = sadd.s32 1, %s1860_s16  ;;  %s63_s19 = sadd.s32 1, %s1852_s14  ;;  %s1864_s17 = sphi %s1908_s17, %s18_s17   ;;  %s1860_s16 = sphi %s1906_s16, %s2196_s16   ;;  %s1856_s15 = sphi %s1904_s15, %s2195_s15   ;;  %s1852_s14 = sphi %s1902_s14, %s2194_s14   ;;  %s1848_s13 = sphi %s1900_s13, %s2193_s13   ;;  %s1844_s12 = sphi %s1898_s12, %s2192_s12  }
   0x7   : > { %p28_p0 = scmp.ge.s32.totalorder %s27_s18, 2  ;;  %p70_p1 = scmp.ne.s32.totalorder %s1852_s14, %s1848_s13 }
   0x8   : > { %p71_p2 = scmp.eq.s32.totalorder %s1864_s17, 0  ;;  %p1573_p4 = scmp.lt.s32.totalorder %s1864_s17, 2 }
   0x9   : > { %s2198_s18 = smov (%p28_p0, %s27_s18), 0  ;;  %s168_s21 = sand.u32 1, %s1864_s17  }
   0xa   : > { %p72_p3 = por %p71_p2, %p70_p1  ;;  %s60_s20 = ssub.s32 %s1860_s16, %s2198_s18 }
   0xb   : > { %p61_p5 = scmp.eq.s32.totalorder %s60_s20, 0  ;;  %s170_s22 = sand.u32 1, %s1852_s14  }
   0xc   : > { %s1496_s23 = sshll.u32 %s1860_s16, 9  ;;  %s1372_s25 = sshll.u32 %s170_s22, 9 }
   0xd   : > { %s1942_s24 = scalar_select %p61_p5, %s1852_s14, %s63_s19  }
   0xe   : > { %s178_s28 = scalar_lea.hbm %s2185_s1, %s1496_s23  ;;  %p1949_p6 = pnand %p1573_p4, %p72_p3 }
   0xf   : > { %s172_s30 = scalar_lea.vmem [#allocation6], %s1372_s25  ;;  %s1953_s5 = scalar_lea.sflag [#allocation7], %s168_s21 }
  0x10   : > { %s179_s4 = sshll.u32 %s172_s30, 4  ;;  %p1702_p7 = pneg %p1949_p6  ;;  %s180_s4 = int_to_ptr.vmem [resolvable:$true] %s179_s4 }
  0x11   : > { %s1713_s6 = scalar_lea.vmem %s180_s4, 8192  ;;  %s1866_s7 = smov [#allocation6]  }
  0x12   : > { %p1714_p8 = scmp.ne.s32.totalorder %s180_s4, %s1713_s6  ;;  %s1718_s8 = sshll.u32 %s1866_s7, 4  ;;  %s1719_s8 = int_to_ptr.vmem [resolvable:$false] %s1718_s8 }
  0x13   : > { %s1720_s9 = scalar_lea.vmem %s1719_s8, 16384  ;;  %p1721_p11 = scmp.lt.s32.totalorder %s180_s4, %s1719_s8 }
  0x14   : > { %p1716_p9 = pnand %p1714_p8, %p1702_p7  ;;  %p1722_p12 = scmp.lt.s32.totalorder %s1720_s9, %s1713_s6 }
  0x16   : > { %p1717_p10 = pneg %p1716_p9  ;;  %p1723_p13 = por %p1722_p12, %p1721_p11 }
  0x18   : > { %p1724_p0 = pnand %p1723_p13, %p1717_p10 }
  0x1a   : > { %1727 = shalt.err (!%p1724_p0)
}
  0x1b   : > { %s1867_s10 = smov 1024   ;;  %s1868_s11 = smov 512  }
  0x1c   : > { %s1869_s19 = smov 32   ;;  %s1964_s20 = sadd.s32 4294967295, %s1864_s17  }
  0x1d   : > { %1568 = dma.hbm_to_vmem [thread:$0]  (!%p1949_p6), %s178_s28, 8192, %s180_s4, %s1953_s5, %s1867_s10, %s1868_s11, %s1869_s19  }
  0x1e   : > { %p76_p1 = scmp.ne.s32.totalorder %s1848_s13, %s1844_s12  ;;  %p77_p2 = scmp.eq.s32.totalorder %s1964_s20, 0 }
  0x1f   : > { %p1369_p3 = scmp.ge.s32.totalorder %s1864_s17, 1  ;;  %p139_p4 = scmp.lt.s32.totalorder %s1864_s17, 3 }
  0x20   : > { %p1973_p5 = por %p77_p2, %p76_p1  ;;  %s1870_s25 = smov [#allocation3]  }
  0x21   : > { %p1977_p8 = pnand %p1369_p3, %p139_p4  ;;  %s154_s26 = sshll.u32 %s1870_s25, 4  ;;  %s155_s26 = int_to_ptr.vmem [resolvable:$true] %s154_s26 }
  0x22   : > { %s1375_s12 = sshll.u32 %s170_s22, 8  ;;  %s1497_s27 = sshll.u32 %s1860_s16, 12 }
  0x23   : > { %p1561_p9 = pneg %p1977_p8  ;;  %s1995_s6 = scalar_lea.hbm %s2186_s2, %s1497_s27 }
  0x24   : > { %s193_s7 = scalar_lea.vmem [#allocation8], %s1375_s12  ;;  %s1739_s9 = scalar_lea.vmem %s155_s26, 128 }
  0x25   : > { %p1988_p10 = pnand %p1561_p9, %p77_p2  ;;  %s200_s8 = sshll.u32 %s193_s7, 4  ;;  %s1997_s8 = int_to_ptr.vmem [resolvable:$true] %s200_s8 }
  0x26   : > { %p1740_p12 = scmp.ne.s32.totalorder %s155_s26, %s1739_s9  ;;  %p1747_p1 = scmp.lt.s32.totalorder %s155_s26, %s155_s26 }
  0x27   : > { %p1730_p11 = pneg %p1988_p10  ;;  %p1748_p3 = scmp.lt.s32.totalorder %s1739_s9, %s1739_s9 }
  0x29   : > { %p1742_p13 = pnand %p1740_p12, %p1730_p11  ;;  %p1749_p4 = por %p1748_p3, %p1747_p1 }
  0x2b   : > { %p1743_p0 = pneg %p1742_p13 }
  0x2d   : > { %p1750_p9 = pnand %p1749_p4, %p1743_p0 }
  0x2f   : > { %1753 = shalt.err (!%p1750_p9)
}
  0x30   : > { %s1871_s22 = smov 64   ;;  %s1872_s10 = smov 4  }
  0x31   : > { %1564 = dma.hbm_to_vmem [thread:$0]  (!%p1988_p10), %s2184_s0, 128, %s155_s26, [#allocation4], %s1871_s22, %s1871_s22, %s1872_s10  }
  0x32   : > { %s1767_s25 = scalar_lea.vmem %s1997_s8, 4096  ;;  %s1873_s12 = smov [#allocation8]  }
  0x33   : > { %p1768_p11 = scmp.ne.s32.totalorder %s1997_s8, %s1767_s25  ;;  %s1772_s27 = sshll.u32 %s1873_s12, 4  ;;  %s1773_s27 = int_to_ptr.vmem [resolvable:$false] %s1772_s27 }
  0x34   : > { %s1774_s30 = scalar_lea.vmem %s1773_s27, 8192  ;;  %p1775_p0 = scmp.lt.s32.totalorder %s1997_s8, %s1773_s27 }
  0x35   : > { %p1770_p12 = pnand %p1768_p11, %p1702_p7  ;;  %p1776_p1 = scmp.lt.s32.totalorder %s1774_s30, %s1767_s25 }
  0x37   : > { %p1771_p13 = pneg %p1770_p12  ;;  %p1777_p3 = por %p1776_p1, %p1775_p0 }
  0x39   : > { %p1778_p4 = pnand %p1777_p3, %p1771_p13 }
  0x3b   : > { %1781 = shalt.err (!%p1778_p4)
}
  0x3c   : > { %1571 = dma.hbm_to_vmem [thread:$0]  (!%p1949_p6), %s1995_s6, 4096, %s1997_s8, %s1953_s5, %s1871_s22, %s1871_s22, %s1872_s10  }
  0x3d   : > { %212 = sbr.rel (%p1977_p8) target bundleno = 588 (0x24c), region = 32 }
  0x42   : > { %1831 = dma.done.wait (%p77_p2), [#allocation4], 128  }
  0x43   : > { %1833 = vsyncadd (%p77_p2), [#allocation4], 4294967168  ;;  %s218_s26 = sand.u32 1, %s1964_s20   ;;  %s220_s28 = sand.u32 1, %s1848_s13  }
  0x44   : > { %s1380_s29 = sshll.u32 %s220_s28, 9  ;;  %s219_s4 = scalar_lea.sflag [#allocation7], %s218_s26 }
  0x45   : > { %s2027_s7 = scalar_lea.vmem [#allocation6], %s1380_s29 }
  0x46   : > { %1835 = dma.done.wait (%p1973_p5), %s219_s4, 12288  }
  0x47   : > { %1837 = vsyncadd (%p1973_p5), %s219_s4, 4294955008  ;;  %v1874_v0 = vmov 0   ;;  %v317_v1 = vld [vmem:[%s2027_s7 + $0x1c0] sm:$0xff]  ;;  %v318_v3 = vld [vmem:[%s2027_s7 + $0x1c8] sm:$0xff]  ;;  %s1381_s5 = sshll.u32 %s220_s28, 8  ;;  %p1487_p6 = scmp.ne.s32.totalorder %s1856_s15, 0 }
  0x48   : > { %683 = vmatprep.mubr.bf16.mxu0 %v1874_v0  ;;  %726 = vmatprep.mubr.bf16.mxu1 %v1874_v0  ;;  %v321_v2 = vld [vmem:[%s2027_s7 + $0x1e0] sm:$0xff]  ;;  %v322_v5 = vld [vmem:[%s2027_s7 + $0x1e8] sm:$0xff]  ;;  %v319_v63 = vld [vmem:[%s2027_s7 + $0x1d0] sm:$0xff]  ;;  %s2109_s21 = scalar_lea.vmem [#allocation8], %s1381_s5 }
  0x49   : > { %v1440_v4 = vcombine.high %v317_v1, %v321_v2  ;;  %v1439_v6 = vcombine.low %v317_v1, %v321_v2  ;;  %v309_v7 = vld [vmem:[%s2027_s7 + $0x180] sm:$0xff]  ;;  %v1442_v9 = vcombine.high %v318_v3, %v322_v5  ;;  %v1441_v10 = vcombine.low %v318_v3, %v322_v5  ;;  %v310_v12 = vld [vmem:[%s2027_s7 + $0x188] sm:$0xff]  ;;  %v323_v1 = vld [vmem:[%s2027_s7 + $0x1f0] sm:$0xff] }
  0x4a   : > { %v313_v8 = vld [vmem:[%s2027_s7 + $0x1a0] sm:$0xff]  ;;  %v314_v13 = vld [vmem:[%s2027_s7 + $0x1a8] sm:$0xff]  ;;  %v320_v2 = vld [vmem:[%s2027_s7 + $0x1d8] sm:$0xff] }
  0x4b   : > { %v1432_v11 = vcombine.high %v309_v7, %v313_v8  ;;  %v301_v14 = vld [vmem:[%s2027_s7 + $0x140] sm:$0xff]  ;;  %651 = vmatprep.subr.bf16.mxu0 %v1440_v4  ;;  %v1434_v15 = vcombine.high %v310_v12, %v314_v13  ;;  %v302_v17 = vld [vmem:[%s2027_s7 + $0x148] sm:$0xff]  ;;  %694 = vmatprep.subr.bf16.mxu1 %v1442_v9  ;;  %v1431_v19 = vcombine.low %v309_v7, %v313_v8  ;;  %v324_v3 = vld [vmem:[%s2027_s7 + $0x1f8] sm:$0xff] }
  0x4c   : > { %v305_v16 = vld [vmem:[%s2027_s7 + $0x160] sm:$0xff]  ;;  %v306_v18 = vld [vmem:[%s2027_s7 + $0x168] sm:$0xff]  ;;  %652 = vmatpush1.bf16.msra.mxu0 %v1439_v6  ;;  %695 = vmatpush1.bf16.msra.mxu1 %v1441_v10  ;;  %v1433_v20 = vcombine.low %v310_v12, %v314_v13  ;;  %v1444_v6 = vcombine.high %v319_v63, %v323_v1  ;;  %v1446_v7 = vcombine.high %v320_v2, %v324_v3  ;;  %v311_v8 = vld [vmem:[%s2027_s7 + $0x190] sm:$0xff] }
  0x4d   : > { %653 = vmatprep.subr.bf16.mxu0 %v1432_v11  ;;  %v1424_v21 = vcombine.high %v301_v14, %v305_v16  ;;  %696 = vmatprep.subr.bf16.mxu1 %v1434_v15  ;;  %v1426_v22 = vcombine.high %v302_v17, %v306_v18  ;;  %v293_v23 = vld [vmem:[%s2027_s7 + $0x100] sm:$0xff]  ;;  %v294_v25 = vld [vmem:[%s2027_s7 + $0x108] sm:$0xff]  ;;  %v1423_v27 = vcombine.low %v301_v14, %v305_v16  ;;  %v315_v9 = vld [vmem:[%s2027_s7 + $0x1b0] sm:$0xff] }
  0x4e   : > { %v297_v24 = vld [vmem:[%s2027_s7 + $0x120] sm:$0xff]  ;;  %v298_v26 = vld [vmem:[%s2027_s7 + $0x128] sm:$0xff]  ;;  %v1425_v28 = vcombine.low %v302_v17, %v306_v18  ;;  %v2073_v10 = vld [vmem:[#allocation3] sm:$0xff]   ;;  %v1443_v13 = vcombine.low %v319_v63, %v323_v1  ;;  %v1445_v14 = vcombine.low %v320_v2, %v324_v3  ;;  %v1436_v15 = vcombine.high %v311_v8, %v315_v9 }
  0x4f   : > { %v1416_v29 = vcombine.high %v293_v23, %v297_v24  ;;  %v1418_v30 = vcombine.high %v294_v25, %v298_v26  ;;  %v285_v31 = vld [vmem:[%s2027_s7 + $0xc0] sm:$0xff]  ;;  %v286_v33 = vld [vmem:[%s2027_s7 + $0xc8] sm:$0xff]  ;;  %v1415_v35 = vcombine.low %v293_v23, %v297_v24  ;;  %v1417_v36 = vcombine.low %v294_v25, %v298_v26  ;;  %v312_v11 = vld [vmem:[%s2027_s7 + $0x198] sm:$0xff] }
  0x50   : > { %654 = vmatpush1.bf16.msra.mxu0 %v1431_v19  ;;  %697 = vmatpush1.bf16.msra.mxu1 %v1433_v20  ;;  %v289_v32 = vld [vmem:[%s2027_s7 + $0xe0] sm:$0xff]  ;;  %v290_v34 = vld [vmem:[%s2027_s7 + $0xe8] sm:$0xff]  ;;  %v316_v12 = vld [vmem:[%s2027_s7 + $0x1b8] sm:$0xff] }
  0x51   : > { %655 = vmatprep.subr.bf16.mxu0 %v1424_v21  ;;  %698 = vmatprep.subr.bf16.mxu1 %v1426_v22  ;;  %v1408_v37 = vcombine.high %v285_v31, %v289_v32  ;;  %v1410_v38 = vcombine.high %v286_v33, %v290_v34  ;;  %v277_v39 = vld [vmem:[%s2027_s7 + $0x80] sm:$0xff]  ;;  %v278_v41 = vld [vmem:[%s2027_s7 + $0x88] sm:$0xff]  ;;  %v1407_v43 = vcombine.low %v285_v31, %v289_v32  ;;  %v303_v17 = vld [vmem:[%s2027_s7 + $0x150] sm:$0xff] }
  0x52   : > { %v281_v40 = vld [vmem:[%s2027_s7 + $0xa0] sm:$0xff]  ;;  %v282_v42 = vld [vmem:[%s2027_s7 + $0xa8] sm:$0xff]  ;;  %v1409_v44 = vcombine.low %v286_v33, %v290_v34  ;;  %v1438_v16 = vcombine.high %v312_v11, %v316_v12  ;;  %v307_v18 = vld [vmem:[%s2027_s7 + $0x170] sm:$0xff]  ;;  %v1435_v21 = vcombine.low %v311_v8, %v315_v9  ;;  %v1437_v22 = vcombine.low %v312_v11, %v316_v12 }
  0x53   : > { %v1400_v45 = vcombine.high %v277_v39, %v281_v40  ;;  %v1402_v46 = vcombine.high %v278_v41, %v282_v42  ;;  %v269_v47 = vld [vmem:[%s2027_s7 + $0x40] sm:$0xff]  ;;  %v270_v49 = vld [vmem:[%s2027_s7 + $0x48] sm:$0xff]  ;;  %v1399_v51 = vcombine.low %v277_v39, %v281_v40  ;;  %v1401_v52 = vcombine.low %v278_v41, %v282_v42  ;;  %v304_v19 = vld [vmem:[%s2027_s7 + $0x158] sm:$0xff] }
  0x54   : > { %656 = vmatpush1.bf16.msra.mxu0 %v1423_v27  ;;  %699 = vmatpush1.bf16.msra.mxu1 %v1425_v28  ;;  %v273_v48 = vld [vmem:[%s2027_s7 + $0x60] sm:$0xff]  ;;  %v274_v50 = vld [vmem:[%s2027_s7 + $0x68] sm:$0xff]  ;;  %v308_v20 = vld [vmem:[%s2027_s7 + $0x178] sm:$0xff]  ;;  %v1428_v23 = vcombine.high %v303_v17, %v307_v18 }
  0x55   : > { %657 = vmatprep.subr.bf16.mxu0 %v1416_v29  ;;  %700 = vmatprep.subr.bf16.mxu1 %v1418_v30  ;;  %v1392_v53 = vcombine.high %v269_v47, %v273_v48  ;;  %v1394_v54 = vcombine.high %v270_v49, %v274_v50  ;;  %v261_v55 = vld [vmem:[%s2027_s7] sm:$0xff]  ;;  %v262_v57 = vld [vmem:[%s2027_s7 + $0x8] sm:$0xff]  ;;  %v1391_v59 = vcombine.low %v269_v47, %v273_v48  ;;  %v295_v25 = vld [vmem:[%s2027_s7 + $0x110] sm:$0xff] }
  0x56   : > { %v265_v56 = vld [vmem:[%s2027_s7 + $0x20] sm:$0xff]  ;;  %v266_v58 = vld [vmem:[%s2027_s7 + $0x28] sm:$0xff]  ;;  %v1393_v60 = vcombine.low %v270_v49, %v274_v50  ;;  %v1430_v24 = vcombine.high %v304_v19, %v308_v20  ;;  %v299_v26 = vld [vmem:[%s2027_s7 + $0x130] sm:$0xff]  ;;  %v1427_v29 = vcombine.low %v303_v17, %v307_v18  ;;  %v1429_v30 = vcombine.low %v304_v19, %v308_v20 }
  0x57   : > { %v1384_v61 = vcombine.high %v261_v55, %v265_v56  ;;  %v1386_v62 = vcombine.high %v262_v57, %v266_v58  ;;  %v1383_v4 = vcombine.low %v261_v55, %v265_v56  ;;  %v1385_v5 = vcombine.low %v262_v57, %v266_v58  ;;  %v296_v27 = vld [vmem:[%s2027_s7 + $0x118] sm:$0xff]  ;;  %v287_v33 = vld [vmem:[%s2027_s7 + $0xd0] sm:$0xff]  ;;  %v1644_v11 = vld [vmem:[%s2109_s21 + $0x68] sm:$0xff]  }
  0x58   : > { %658 = vmatpush1.bf16.msra.mxu0 %v1415_v35  ;;  %701 = vmatpush1.bf16.msra.mxu1 %v1417_v36  ;;  %v300_v28 = vld [vmem:[%s2027_s7 + $0x138] sm:$0xff]  ;;  %v1420_v31 = vcombine.high %v295_v25, %v299_v26  ;;  %v291_v34 = vld [vmem:[%s2027_s7 + $0xf0] sm:$0xff]  ;;  %v1645_v12 = vld [vmem:[%s2109_s21 + $0xe8] sm:$0xff]  }
  0x59   : > { %659 = vmatprep.subr.bf16.mxu0 %v1408_v37  ;;  %702 = vmatprep.subr.bf16.mxu1 %v1410_v38  ;;  %v1422_v32 = vcombine.high %v296_v27, %v300_v28  ;;  %v288_v35 = vld [vmem:[%s2027_s7 + $0xd8] sm:$0xff]  ;;  %v1419_v37 = vcombine.low %v295_v25, %v299_v26  ;;  %v1412_v38 = vcombine.high %v287_v33, %v291_v34  ;;  %v279_v40 = vld [vmem:[%s2027_s7 + $0x90] sm:$0xff]  ;;  %v1650_v17 = vld [vmem:[%s2109_s21 + $0x20] sm:$0xff]  }
  0x5a   : > { %v292_v36 = vld [vmem:[%s2027_s7 + $0xf8] sm:$0xff]  ;;  %v283_v41 = vld [vmem:[%s2027_s7 + $0xb0] sm:$0xff]  ;;  %v1651_v18 = vld [vmem:[%s2109_s21 + $0xa0] sm:$0xff]  }
  0x5b   : > { %v1414_v39 = vcombine.high %v288_v35, %v292_v36  ;;  %v280_v42 = vld [vmem:[%s2027_s7 + $0x98] sm:$0xff]  ;;  %v271_v48 = vld [vmem:[%s2027_s7 + $0x50] sm:$0xff] }
  0x5c   : > { %660 = vmatpush1.bf16.msra.mxu0 %v1407_v43  ;;  %703 = vmatpush1.bf16.msra.mxu1 %v1409_v44  ;;  %v284_v43 = vld [vmem:[%s2027_s7 + $0xb8] sm:$0xff]  ;;  %v1411_v44 = vcombine.low %v287_v33, %v291_v34  ;;  %v275_v49 = vld [vmem:[%s2027_s7 + $0x70] sm:$0xff]  ;;  %v1666_v33 = vld [vmem:[%s2109_s21] sm:$0xff]  }
  0x5d   : > { %661 = vmatprep.subr.bf16.mxu0 %v1400_v45  ;;  %704 = vmatprep.subr.bf16.mxu1 %v1402_v46  ;;  %v1413_v45 = vcombine.low %v288_v35, %v292_v36  ;;  %v1404_v46 = vcombine.high %v279_v40, %v283_v41  ;;  %v1406_v47 = vcombine.high %v280_v42, %v284_v43  ;;  %v272_v50 = vld [vmem:[%s2027_s7 + $0x58] sm:$0xff]  ;;  %v263_v56 = vld [vmem:[%s2027_s7 + $0x10] sm:$0xff]  ;;  %v1667_v34 = vld [vmem:[%s2109_s21 + $0x80] sm:$0xff]  }
  0x5e   : > { %v267_v57 = vld [vmem:[%s2027_s7 + $0x30] sm:$0xff]  ;;  %v264_v58 = vld [vmem:[%s2027_s7 + $0x18] sm:$0xff] }
  0x5f   : > { %v1387_v1 = vcombine.low %v263_v56, %v267_v57  ;;  %v1636_v3 = vld [vmem:[%s2109_s21 + $0x78] sm:$0xff]   ;;  %v1641_v8 = vld [vmem:[%s2109_s21 + $0xf0] sm:$0xff]  }
  0x60   : > { %662 = vmatpush1.bf16.msra.mxu0 %v1399_v51  ;;  %705 = vmatpush1.bf16.msra.mxu1 %v1401_v52  ;;  %v276_v51 = vld [vmem:[%s2027_s7 + $0x78] sm:$0xff]  ;;  %v1403_v52 = vcombine.low %v279_v40, %v283_v41  ;;  %v1642_v9 = vld [vmem:[%s2109_s21 + $0x30] sm:$0xff]  }
  0x61   : > { %663 = vmatprep.subr.bf16.mxu0 %v1392_v53  ;;  %706 = vmatprep.subr.bf16.mxu1 %v1394_v54  ;;  %v1405_v53 = vcombine.low %v280_v42, %v284_v43  ;;  %v1396_v54 = vcombine.high %v271_v48, %v275_v49  ;;  %v1398_v55 = vcombine.high %v272_v50, %v276_v51  ;;  %v1652_v19 = vld [vmem:[%s2109_s21 + $0x58] sm:$0xff]   ;;  %v1658_v25 = vld [vmem:[%s2109_s21 + $0x10] sm:$0xff]  }
  0x62   : > { %v1653_v20 = vld [vmem:[%s2109_s21 + $0xd8] sm:$0xff]   ;;  %v1659_v26 = vld [vmem:[%s2109_s21 + $0x90] sm:$0xff]  }
  0x64   : > { %664 = vmatpush1.bf16.msra.mxu0 %v1391_v59  ;;  %707 = vmatpush1.bf16.msra.mxu1 %v1393_v60  ;;  %v268_v59 = vld [vmem:[%s2027_s7 + $0x38] sm:$0xff]  ;;  %v1395_v60 = vcombine.low %v271_v48, %v275_v49 }
  0x65   : > { %665 = vmatprep.subr.bf16.mxu0 %v1384_v61  ;;  %708 = vmatprep.subr.bf16.mxu1 %v1386_v62  ;;  %v1397_v61 = vcombine.low %v272_v50, %v276_v51  ;;  %v1388_v62 = vcombine.high %v263_v56, %v267_v57  ;;  %v1390_v63 = vcombine.high %v264_v58, %v268_v59 }
  0x66   : > { %v1389_v2 = vcombine.low %v264_v58, %v268_v59 }
  0x68   : > { %666 = vmatpush1.bf16.msra.mxu0 %v1383_v4  ;;  %709 = vmatpush1.bf16.msra.mxu1 %v1385_v5  ;;  %v1637_v4 = vld [vmem:[%s2109_s21 + $0xf8] sm:$0xff]  }
  0x69   : > { %737 = vmatprep.subr.bf16.mxu0 %v1444_v6  ;;  %780 = vmatprep.subr.bf16.mxu1 %v1446_v7  ;;  %v1638_v5 = vld [vmem:[%s2109_s21 + $0x38] sm:$0xff]   ;;  %v1640_v7 = vld [vmem:[%s2109_s21 + $0x70] sm:$0xff]  }
  0x6a   : > { %v1639_v6 = vld [vmem:[%s2109_s21 + $0xb8] sm:$0xff]  }
  0x6b   : > { %684 = vmatmul.mubr.bf16.vlgmr.msra.gmra.mxu0 %v2073_v10  ;;  %727 = vmatmul.mubr.bf16.vlgmr.msra.gmra.mxu1 %v2073_v10 }
  0x6c   : > { %738 = vmatpush1.bf16.msra.mxu0 %v1443_v13  ;;  %781 = vmatpush1.bf16.msra.mxu1 %v1445_v14  ;;  %v1646_v13 = vld [vmem:[%s2109_s21 + $0x28] sm:$0xff]  }
  0x6d   : > { %739 = vmatprep.subr.bf16.mxu0 %v1436_v15  ;;  %782 = vmatprep.subr.bf16.mxu1 %v1438_v16  ;;  %v1647_v14 = vld [vmem:[%s2109_s21 + $0xa8] sm:$0xff]   ;;  %v1648_v15 = vld [vmem:[%s2109_s21 + $0x60] sm:$0xff]  }
  0x6e   : > { %769 = vmatprep.mubr.bf16.mxu0 %v1874_v0  ;;  %812 = vmatprep.mubr.bf16.mxu1 %v1874_v0  ;;  %v1421_v0 = vcombine.low %v296_v27, %v300_v28  ;;  %v1649_v16 = vld [vmem:[%s2109_s21 + $0xe0] sm:$0xff]   ;;  %v1660_v27 = vld [vmem:[%s2109_s21 + $0x48] sm:$0xff]  }
  0x6f   : > { %v1661_v28 = vld [vmem:[%s2109_s21 + $0xc8] sm:$0xff]  }
  0x70   : > { %740 = vmatpush1.bf16.msra.mxu0 %v1435_v21  ;;  %783 = vmatpush1.bf16.msra.mxu1 %v1437_v22  ;;  %v1654_v21 = vld [vmem:[%s2109_s21 + $0x18] sm:$0xff]  }
  0x71   : > { %741 = vmatprep.subr.bf16.mxu0 %v1428_v23  ;;  %784 = vmatprep.subr.bf16.mxu1 %v1430_v24  ;;  %v1655_v22 = vld [vmem:[%s2109_s21 + $0x98] sm:$0xff]   ;;  %v1656_v23 = vld [vmem:[%s2109_s21 + $0x50] sm:$0xff]  }
  0x72   : > { %v1657_v24 = vld [vmem:[%s2109_s21 + $0xd0] sm:$0xff]  }
  0x74   : > { %742 = vmatpush1.bf16.msra.mxu0 %v1427_v29  ;;  %785 = vmatpush1.bf16.msra.mxu1 %v1429_v30  ;;  %v1662_v29 = vld [vmem:[%s2109_s21 + $0x8] sm:$0xff]  }
  0x75   : > { %743 = vmatprep.subr.bf16.mxu0 %v1420_v31  ;;  %786 = vmatprep.subr.bf16.mxu1 %v1422_v32  ;;  %v1663_v30 = vld [vmem:[%s2109_s21 + $0x88] sm:$0xff]   ;;  %v1664_v31 = vld [vmem:[%s2109_s21 + $0x40] sm:$0xff]  }
  0x76   : > { %v1665_v32 = vld [vmem:[%s2109_s21 + $0xc0] sm:$0xff]  }
  0x78   : > { %744 = vmatpush1.bf16.msra.mxu0 %v1419_v37  ;;  %787 = vmatpush1.bf16.msra.mxu1 %v1421_v0 }
  0x79   : > { %745 = vmatprep.subr.bf16.mxu0 %v1412_v38  ;;  %788 = vmatprep.subr.bf16.mxu1 %v1414_v39 }
  0x7c   : > { %746 = vmatpush1.bf16.msra.mxu0 %v1411_v44  ;;  %789 = vmatpush1.bf16.msra.mxu1 %v1413_v45 }
  0x7d   : > { %747 = vmatprep.subr.bf16.mxu0 %v1404_v46  ;;  %790 = vmatprep.subr.bf16.mxu1 %v1406_v47 }
  0x80   : > { %748 = vmatpush1.bf16.msra.mxu0 %v1403_v52  ;;  %791 = vmatpush1.bf16.msra.mxu1 %v1405_v53 }
  0x81   : > { %749 = vmatprep.subr.bf16.mxu0 %v1396_v54  ;;  %792 = vmatprep.subr.bf16.mxu1 %v1398_v55 }
  0x84   : > { %750 = vmatpush1.bf16.msra.mxu0 %v1395_v60  ;;  %793 = vmatpush1.bf16.msra.mxu1 %v1397_v61 }
  0x85   : > { %751 = vmatprep.subr.bf16.mxu0 %v1388_v62  ;;  %794 = vmatprep.subr.bf16.mxu1 %v1390_v63 }
  0x88   : > { %752 = vmatpush1.bf16.msra.mxu0 %v1387_v1  ;;  %795 = vmatpush1.bf16.msra.mxu1 %v1389_v2 }
  0x89   : > { %1505 = vmatprep.subr.bf16.mxu0 %v1636_v3  ;;  %1527 = vmatprep.subr.bf16.mxu1 %v1637_v4 }
  0x8b   : > { %770 = vmatmul.mubr.bf16.vlgmr.msra.gmra.mxu0 %v2073_v10  ;;  %813 = vmatmul.mubr.bf16.vlgmr.msra.gmra.mxu1 %v2073_v10  ;;  %v1643_v10 = vld [vmem:[%s2109_s21 + $0xb0] sm:$0xff]  }
  0x8c   : > { %1506 = vmatpush3.bf16.msra.mxu0 %v1638_v5  ;;  %1528 = vmatpush3.bf16.msra.mxu1 %v1639_v6 }
  0x8d   : > { %1507 = vmatprep.subr.bf16.mxu0 %v1640_v7  ;;  %1529 = vmatprep.subr.bf16.mxu1 %v1641_v8 }
  0x90   : > { %1508 = vmatpush3.bf16.msra.mxu0 %v1642_v9  ;;  %1530 = vmatpush3.bf16.msra.mxu1 %v1643_v10 }
  0x91   : > { %1509 = vmatprep.subr.bf16.mxu0 %v1644_v11  ;;  %1531 = vmatprep.subr.bf16.mxu1 %v1645_v12 }
  0x94   : > { %1510 = vmatpush3.bf16.msra.mxu0 %v1646_v13  ;;  %1532 = vmatpush3.bf16.msra.mxu1 %v1647_v14 }
  0x95   : > { %1511 = vmatprep.subr.bf16.mxu0 %v1648_v15  ;;  %1533 = vmatprep.subr.bf16.mxu1 %v1649_v16 }
  0x98   : > { %1512 = vmatpush3.bf16.msra.mxu0 %v1650_v17  ;;  %1534 = vmatpush3.bf16.msra.mxu1 %v1651_v18 }
  0x99   : > { %1513 = vmatprep.subr.bf16.mxu0 %v1652_v19  ;;  %1535 = vmatprep.subr.bf16.mxu1 %v1653_v20 }
  0x9c   : > { %1514 = vmatpush3.bf16.msra.mxu0 %v1654_v21  ;;  %1536 = vmatpush3.bf16.msra.mxu1 %v1655_v22 }
  0x9d   : > { %1515 = vmatprep.subr.bf16.mxu0 %v1656_v23  ;;  %1537 = vmatprep.subr.bf16.mxu1 %v1657_v24 }
  0xa0   : > { %1516 = vmatpush3.bf16.msra.mxu0 %v1658_v25  ;;  %1538 = vmatpush3.bf16.msra.mxu1 %v1659_v26 }
  0xa1   : > { %1517 = vmatprep.subr.bf16.mxu0 %v1660_v27  ;;  %1539 = vmatprep.subr.bf16.mxu1 %v1661_v28 }
  0xa4   : > { %1518 = vmatpush3.bf16.msra.mxu0 %v1662_v29  ;;  %1540 = vmatpush3.bf16.msra.mxu1 %v1663_v30 }
  0xa5   : > { %1519 = vmatprep.subr.bf16.mxu0 %v1664_v31  ;;  %1541 = vmatprep.subr.bf16.mxu1 %v1665_v32 }
  0xa8   : > { %1520 = vmatpush3.bf16.msra.mxu0 %v1666_v33  ;;  %1542 = vmatpush3.bf16.msra.mxu1 %v1667_v34 }
 0x12b   : > { %v2143_v35 = vpop.f32.mrf.mxu0  ;;  %v2146_v37 = vpop.f32.mrf.mxu1 }
 0x12c   : > { %v1447_v36 = vmul.f32 -1.442695, %v2143_v35  ;;  %v1449_v0 = vmul.f32 -1.442695, %v2146_v37 }
 0x12d   : > { %v687_v38 = vpop.f32.mrf.mxu0  ;;  %v730_v40 = vpop.f32.mrf.mxu1 }
 0x12e   : > { %1668 = vpow2.f32 %v1447_v36  ;;  %v1448_v39 = vmul.f32 -1.442695, %v687_v38  ;;  %v1450_v41 = vmul.f32 -1.442695, %v730_v40 }
 0x12f   : > { %1670 = vpow2.f32 %v1449_v0  ;;  %v689_v42 = vpop.f32.mrf.mxu0  ;;  %v732_v44 = vpop.f32.mrf.mxu1 }
 0x130   : > { %1672 = vpow2.f32 %v1448_v39  ;;  %v1451_v43 = vmul.f32 -1.442695, %v689_v42  ;;  %v1453_v45 = vmul.f32 -1.442695, %v732_v44 }
 0x131   : > { %1674 = vpow2.f32 %v1450_v41  ;;  %v691_v46 = vpop.f32.mrf.mxu0  ;;  %v734_v48 = vpop.f32.mrf.mxu1 }
 0x132   : > { %1676 = vpow2.f32 %v1451_v43  ;;  %v1452_v47 = vmul.f32 -1.442695, %v691_v46  ;;  %v1454_v49 = vmul.f32 -1.442695, %v734_v48 }
 0x133   : > { %1678 = vpow2.f32 %v1453_v45 }
 0x134   : > { %1680 = vpow2.f32 %v1452_v47 }
 0x135   : > { %1682 = vpow2.f32 %v1454_v49 }
 0x13b   : > { %v1669_v50 = vpop.eup %1668 }
 0x13c   : > { %v1671_v51 = vpop.eup %1670  ;;  %v847_v52 = vadd.f32 1.0, %v1669_v50 }
 0x13d   : > { %v1673_v53 = vpop.eup %1672  ;;  %v849_v54 = vadd.f32 1.0, %v1671_v51 }
 0x13e   : > { %v1675_v55 = vpop.eup %1674  ;;  %1684 = vrcp.f32 %v847_v52  ;;  %v848_v56 = vadd.f32 1.0, %v1673_v53 }
 0x13f   : > { %v1677_v57 = vpop.eup %1676  ;;  %1686 = vrcp.f32 %v849_v54  ;;  %v850_v58 = vadd.f32 1.0, %v1675_v55 }
 0x140   : > { %v1679_v59 = vpop.eup %1678  ;;  %1688 = vrcp.f32 %v848_v56  ;;  %v851_v60 = vadd.f32 1.0, %v1677_v57 }
 0x141   : > { %v1681_v61 = vpop.eup %1680  ;;  %1690 = vrcp.f32 %v850_v58  ;;  %v853_v62 = vadd.f32 1.0, %v1679_v59 }
 0x142   : > { %v1683_v63 = vpop.eup %1682  ;;  %1692 = vrcp.f32 %v851_v60  ;;  %v852_v1 = vadd.f32 1.0, %v1681_v61 }
 0x143   : > { %1694 = vrcp.f32 %v853_v62  ;;  %v854_v2 = vadd.f32 1.0, %v1683_v63 }
 0x144   : > { %1696 = vrcp.f32 %v852_v1 }
 0x145   : > { %1698 = vrcp.f32 %v854_v2 }
 0x14b   : > { %v1685_v3 = vpop.eup %1684  ;;  %v771_v4 = vpop.f32.mrf.mxu0 }
 0x14c   : > { %v1687_v5 = vpop.eup %1686  ;;  %v814_v6 = vpop.f32.mrf.mxu1  ;;  %v871_v18 = vmul.f32 %v1685_v3, %v2143_v35 }
 0x14d   : > { %v1689_v7 = vpop.eup %1688  ;;  %v773_v8 = vpop.f32.mrf.mxu0  ;;  %v873_v22 = vmul.f32 %v1687_v5, %v2146_v37 }
 0x14e   : > { %v1691_v9 = vpop.eup %1690  ;;  %v816_v10 = vpop.f32.mrf.mxu1  ;;  %v872_v14 = vmul.f32 %v1689_v7, %v687_v38  ;;  %v879_v31 = vmul.f32 %v871_v18, %v771_v4 }
 0x14f   : > { %v1693_v11 = vpop.eup %1692  ;;  %v775_v12 = vpop.f32.mrf.mxu0  ;;  %v874_v19 = vmul.f32 %v1691_v9, %v730_v40  ;;  %v881_v34 = vmul.f32 %v873_v22, %v814_v6 }
 0x150   : > { %v1695_v13 = vpop.eup %1694  ;;  %v875_v15 = vmul.f32 %v1693_v11, %v689_v42  ;;  %v818_v16 = vpop.f32.mrf.mxu1  ;;  %v880_v27 = vmul.f32 %v872_v14, %v773_v8 }
 0x151   : > { %v1697_v17 = vpop.eup %1696  ;;  %v877_v20 = vmul.f32 %v1695_v13, %v732_v44  ;;  %v777_v26 = vpop.f32.mrf.mxu0  ;;  %v882_v32 = vmul.f32 %v874_v19, %v816_v10 }
 0x152   : > { %v1699_v21 = vpop.eup %1698  ;;  %v876_v23 = vmul.f32 %v1697_v17, %v691_v46  ;;  %v883_v25 = vmul.f32 %v875_v15, %v775_v12  ;;  %v820_v30 = vpop.f32.mrf.mxu1 }
 0x153   : > { %v878_v24 = vmul.f32 %v1699_v21, %v734_v48  ;;  %v885_v28 = vmul.f32 %v877_v20, %v818_v16 }
 0x154   : > { %v884_v29 = vmul.f32 %v876_v23, %v777_v26  ;;  %v887_v0 = vpack.c.bf16 %v883_v25, %v879_v31 }
 0x155   : > { %v886_v33 = vmul.f32 %v878_v24, %v820_v30  ;;  %v889_v38 = vpack.c.bf16 %v885_v28, %v881_v34 }
 0x156   : > { %v888_v36 = vpack.c.bf16 %v884_v29, %v880_v27 }
 0x157   : > { %v890_v35 = vpack.c.bf16 %v886_v33, %v882_v32 }
 0x158   : > { %1179 = vmatprep.mubr.bf16.mxu0 %v888_v36 }
 0x159   : > { %1220 = vmatprep.mubr.bf16.mxu1 %v890_v35  ;;  %1180 = vmatmul.mubr.bf16.vlgmr.msra.gmra.mxu0 %v887_v0 }
 0x15a   : > { %1221 = vmatmul.mubr.bf16.vlgmr.msra.gmra.mxu1 %v889_v38 }
 0x219   : > { %v1521_v37 = vpop.f32.mrf.mxu0 }
 0x21a   : > { %v1543_v39 = vpop.f32.mrf.mxu1 }
 0x21b   : > { %v1522_v40 = vpop.f32.mrf.mxu0 }
 0x21c   : > { %v1523_v41 = vadd.f32 %v1522_v40, %v1521_v37  ;;  %v1544_v42 = vpop.f32.mrf.mxu1 }
 0x21d   : > { %v1545_v43 = vadd.f32 %v1544_v42, %v1543_v39  ;;  %v1524_v44 = vpop.f32.mrf.mxu0 }
 0x21e   : > { %v1546_v45 = vpop.f32.mrf.mxu1 }
 0x21f   : > { %v1223_v46 = vadd.f32 %v1545_v43, %v1523_v41  ;;  %v1525_v47 = vpop.f32.mrf.mxu0  ;;  %1232 = sbr.rel (%p1487_p6) target bundleno = 550 (0x226), region = 48 }
 0x220   : > { %v1526_v48 = vadd.f32 %v1525_v47, %v1524_v44  ;;  %v1547_v49 = vpop.f32.mrf.mxu1 }
 0x221   : > { %v1548_v50 = vadd.f32 %v1547_v49, %v1546_v45 }
 0x223   : > { %v1226_v51 = vadd.f32 %v1548_v50, %v1526_v48 }
 0x224   : > { %1233 = vst [vmem:[#allocation2] sm:$0xff] %v1223_v46 }
 0x225   : > { %1234 = vst [vmem:[#allocation2 + $0x8] sm:$0xff] %v1226_v51 }
 0x226 PF: > { %p1488_p7 = scmp.eq.s32.totalorder %s1856_s15, 0 }
 0x228   : > { %1238 = sbr.rel (%p1488_p7) target bundleno = 561 (0x231), region = 52 }
 0x22d   : > { %v1239_v52 = vld [vmem:[#allocation2] sm:$0xff]  ;;  %v1240_v53 = vld [vmem:[#allocation2 + $0x8] sm:$0xff] }
 0x22e   : > { %v1241_v54 = vadd.f32 %v1239_v52, %v1223_v46  ;;  %v1242_v55 = vadd.f32 %v1240_v53, %v1226_v51 }
 0x230   : > { %1243 = vst [vmem:[#allocation2] sm:$0xff] %v1241_v54  ;;  %1244 = vst [vmem:[#allocation2 + $0x8] sm:$0xff] %v1242_v55 }
 0x231 PF: > { %p1489_p2 = scmp.ne.s32.totalorder %s1856_s15, 1 }
 0x233   : > { %1248 = sbr.rel (%p1489_p2) target bundleno = 572 (0x23c), region = 56 }
 0x238   : > { %v1249_v56 = vld [vmem:[#allocation2] sm:$0xff]  ;;  %v1250_v57 = vld [vmem:[#allocation2 + $0x8] sm:$0xff] }
 0x239   : > { %v1503_v58 = vpack.c.bf16 %v1250_v57, %v1249_v56 }
 0x23b   : > { %1504 = vst [vmem:[#allocation9] sm:$0xff] %v1503_v58  }
 0x23c PF: > { %p1575_p5 = scmp.eq.s32.totalorder %s1964_s20, 1  ;;  %s1875_s23 = smov [#allocation9]  }
 0x23d   : > { %s1270_s6 = sshll.u32 %s1875_s23, 4  ;;  %s1271_s6 = int_to_ptr.vmem [resolvable:$true] %s1270_s6 }
 0x23e   : > { %s1782_s8 = scalar_lea.vmem %s1271_s6, 128  ;;  %p1789_p11 = scmp.lt.s32.totalorder %s1271_s6, %s1271_s6 }
 0x23f   : > { %p1783_p8 = scmp.ne.s32.totalorder %s1271_s6, %s1782_s8  ;;  %p1790_p12 = scmp.lt.s32.totalorder %s1782_s8, %s1782_s8 }
 0x241   : > { %p1784_p10 = pnand %p1783_p8, %p1575_p5  ;;  %p1791_p13 = por %p1790_p12, %p1789_p11 }
 0x243   : > { %p1785_p9 = pneg %p1784_p10 }
 0x245   : > { %p1792_p0 = pnand %p1791_p13, %p1785_p9 }
 0x247   : > { %1795 = shalt.err (!%p1792_p0)
}
 0x248   : > { %s1876_s15 = smov 64   ;;  %s1877_s9 = smov 4  }
 0x249   : > { %1558 = dma.vmem_to_hbm [thread:$0]  (%p1575_p5), %s1271_s6, 128, %s2187_s3, [#allocation5], %s1876_s15, %s1876_s15, %s1877_s9  }
 0x24a   : > { %1839 = dma.done.wait (%p1575_p5), [#allocation5], 128  }
 0x24b   : > { %1841 = vsyncadd (%p1575_p5), [#allocation5], 4294967168 }
 0x24c PF: > { %s18_s17 = sadd.s32 1, %s1864_s17   ;;  %s2192_s12 = smov %s1848_s13 }
 0x24d   : > { %p15_p1 = scmp.ge.s32.totalorder %s18_s17, 4   ;;  %s2193_s13 = smov %s1852_s14 }
 0x24e   : > { %s2194_s14 = smov %s1942_s24  ;;  %s2195_s15 = smov %s1860_s16 }
 0x24f   : > { %s2196_s16 = smov %s2198_s18  ;;  %17 = sbr.rel (!%p15_p1) target bundleno = 6 (0x6), region = 99 }
 0x254   :  { %1286 = vsyncpa [#allocation4], 1 }
 0x255   :  { %1288 = vsyncpa [#allocation4 + $0x1], 1 }
 0x256   :  { %1289 = vsyncpa [#allocation7], 1 }
 0x257   :  { %1291 = vsyncpa [#allocation7 + $0x1], 1 }
 0x258   :  { %1292 = vsyncpa [#allocation5], 1 }
 0x259   :  { %1294 = vsyncpa [#allocation5 + $0x1], 1 }

</bundles_post_ra>
